<compile_context>
chip_gen: v6e
topology: v6e:2x2x1
jax: 0.10.0
libtpu: 0.0.40
codegen_flags: <defaults>
</compile_context>

<pallas_src>
import jax
import jax.numpy as jnp
from jax.experimental import pallas as pl
from jax.experimental.pallas import tpu as pltpu

BN_EPS = 1e-5          # torch.nn.BatchNorm2d default eps
LEAKY_SLOPE = 0.1      # torch.nn.LeakyReLU(0.1)
TK_TARGET = 512        # contraction (K) tile target, multiple of 128


def _round_up(a, b):
    return (a + b - 1) // b * b


def _cdiv(a, b):
    return -(-a // b)


def _vmem_config():
    """Generation-specific (vmem_limit_bytes, spatial tile target)."""
    try:
        kind = jax.devices()[0].device_kind.lower()
    except Exception:
        kind = ""
    if ("v5" in kind) or ("v6" in kind):        # 128 MiB VMEM per TensorCore
        return 96 * 1024 * 1024, 2048
    return 48 * 1024 * 1024, 1024               # v7x / unknown: 64 MiB per core


VMEM_CAP, T_HW_TARGET = _vmem_config()


# ---------------------------------------------------------------------------
# kernels (grid = (N, spatial_tiles, k_tiles); K innermost / "arbitrary")
# ---------------------------------------------------------------------------
def _conv_bn_leaky_kernel(w_ref, shift_ref, p_ref, o_ref, acc_ref):
    kk = pl.program_id(2)

    @pl.when(kk == 0)
    def _():
        acc_ref[...] = jnp.zeros_like(acc_ref)

    acc_ref[...] += jnp.dot(w_ref[...], p_ref[...],
                            preferred_element_type=jnp.float32)

    @pl.when(kk == pl.num_programs(2) - 1)
    def _():
        y = acc_ref[...] + shift_ref[...]              # folded-BN shift
        y = jnp.where(y > 0, y, LEAKY_SLOPE * y)       # LeakyReLU(0.1)
        o_ref[...] = y.astype(o_ref.dtype)


def _conv_bn_leaky_res_kernel(w_ref, shift_ref, p_ref, skip_ref, o_ref, acc_ref):
    """Same as above, but fuses the ResidualBlock skip add into the store."""
    kk = pl.program_id(2)

    @pl.when(kk == 0)
    def _():
        acc_ref[...] = jnp.zeros_like(acc_ref)

    acc_ref[...] += jnp.dot(w_ref[...], p_ref[...],
                            preferred_element_type=jnp.float32)

    @pl.when(kk == pl.num_programs(2) - 1)
    def _():
        y = acc_ref[...] + shift_ref[...]
        y = jnp.where(y > 0, y, LEAKY_SLOPE * y)
        o_ref[...] = (skip_ref[...].astype(jnp.float32) + y).astype(o_ref.dtype)


def _conv_bias_kernel(w_ref, bias_ref, p_ref, o_ref, acc_ref):
    """bn_act=False branch of CNNBlock: W @ patches + bias."""
    kk = pl.program_id(2)

    @pl.when(kk == 0)
    def _():
        acc_ref[...] = jnp.zeros_like(acc_ref)

    acc_ref[...] += jnp.dot(w_ref[...], p_ref[...],
                            preferred_element_type=jnp.float32)

    @pl.when(kk == pl.num_programs(2) - 1)
    def _():
        o_ref[...] = (acc_ref[...] + bias_ref[...]).astype(o_ref.dtype)


# ---------------------------------------------------------------------------
# wrapper: fused CNNBlock.forward (+ optional fused residual add)
# ---------------------------------------------------------------------------
def _im2col(x, kh, kw, stride, padding):
    n, c, h, w = x.shape
    xp = jnp.pad(x, ((0, 0), (0, 0), (padding, padding), (padding, padding)))
    oh = (h + 2 * padding - kh) // stride + 1
    ow = (w + 2 * padding - kw) // stride + 1
    cols = []
    for ki in range(kh):
        for kj in range(kw):
            cols.append(xp[:, :, ki:ki + stride * oh:stride,
                               kj:kj + stride * ow:stride])
    p = jnp.stack(cols, axis=2)                    # (N, C, KH*KW, OH, OW)
    return p.reshape(n, c * kh * kw, oh * ow), oh, ow


def cnn_block(x, params, *, stride=1, padding=0, skip=None, tk=None,
              out_dtype=None):
    """Pallas-fused CNNBlock.forward; if `skip` is given, returns skip + block(x)."""
    w = params["w"]                                # (Cout, Cin, KH, KW)
    use_bn_act = params["use_bn_act"]
    cout, cin, kh, kw = w.shape
    n = x.shape[0]
    out_dtype = x.dtype if out_dtype is None else out_dtype

    # ---- patch extraction (bf16 MXU operand); 1x1 convs bypass im2col ----
    xb = x.astype(jnp.bfloat16)
    if kh == 1 and kw == 1 and padding == 0:
        if stride != 1:
            xb = xb[:, :, ::stride, ::stride]
        oh, ow = xb.shape[2], xb.shape[3]
        patches = xb.reshape(n, cin, oh * ow)
    else:
        patches, oh, ow = _im2col(xb, kh, kw, stride, padding)
    k_dim = cin * kh * kw
    ohw = oh * ow

    # ---- fold BN into the weights; single (Cout,1) f32 shift ----
    w2 = w.reshape(cout, k_dim).astype(jnp.float32)
    if use_bn_act:
        scale = params["gamma"] * jax.lax.rsqrt(params["var"] + BN_EPS)
        w2 = w2 * scale[:, None]
        shift = params["beta"] - params["mean"] * scale
    else:
        if skip is not None:
            raise ValueError("residual fusion only supported with bn_act=True")
        shift = params["b"]
    w2 = w2.astype(jnp.bfloat16)                   # bf16 MXU operand
    shift = shift.reshape(cout, 1).astype(jnp.float32)

    # ---- tiling: lane-dense spatial tiles + K (contraction) tiles ----
    tk = TK_TARGET if tk is None else tk
    if k_dim <= tk:
        tk_eff, k_pad = k_dim, k_dim               # single full-extent K block
    else:
        tk_eff = _round_up(tk, 128)                # multi-tile K: multiple of 128
        k_pad = _round_up(k_dim, tk_eff)
    n_k = k_pad // tk_eff

    ohw128 = _round_up(ohw, 128)
    t_hw = min(T_HW_TARGET, ohw128)
    t_hw = _round_up(_cdiv(ohw128, _cdiv(ohw128, t_hw)), 128)   # even split

    out_isz = jnp.dtype(out_dtype).itemsize
    skip_isz = jnp.dtype(skip.dtype).itemsize if skip is not None else 0

    def vmem_need(thw):
        buf = 2                                               # double buffering
        need = 2 * cout * tk_eff * buf                        # bf16 weight blocks
        need += 2 * tk_eff * thw * buf                        # bf16 patch blocks
        need += out_isz * cout * thw * buf                    # output blocks
        need += 4 * _round_up(cout, 8) * 128 * buf            # (Cout,1) shift, lane-padded
        need += 4 * cout * thw                                # f32 accumulator scratch
        if skip is not None:
            need += skip_isz * cout * thw * buf               # fused residual input
        return need

    while t_hw > 128 and vmem_need(t_hw) > int(VMEM_CAP * 0.85):
        t_hw = max(128, _round_up(t_hw // 2, 128))
    # TODO(synk): if still over budget at t_hw=128, shrink tk as well.

    ohw_pad = _round_up(ohw128, t_hw)
    n_hw = ohw_pad // t_hw

    if k_pad != k_dim or ohw_pad != ohw:
        patches = jnp.pad(patches, ((0, 0), (0, k_pad - k_dim),
                                    (0, ohw_pad - ohw)))
    if k_pad != k_dim:
        w2 = jnp.pad(w2, ((0, 0), (0, k_pad - k_dim)))

    # ---- specs ----
    w_spec = pl.BlockSpec((cout, tk_eff), lambda i, j, kk: (0, kk))
    s_spec = pl.BlockSpec((cout, 1), lambda i, j, kk: (0, 0))
    p_spec = pl.BlockSpec((None, tk_eff, t_hw), lambda i, j, kk: (i, kk, j))
    o_spec = pl.BlockSpec((None, cout, t_hw), lambda i, j, kk: (i, 0, j))

    if use_bn_act and skip is not None:
        skip2 = skip.reshape(n, cout, ohw)
        if ohw_pad != ohw:
            skip2 = jnp.pad(skip2, ((0, 0), (0, 0), (0, ohw_pad - ohw)))
        kernel = _conv_bn_leaky_res_kernel
        inputs = (w2, shift, patches, skip2)
        in_specs = [w_spec, s_spec, p_spec,
                    pl.BlockSpec((None, cout, t_hw), lambda i, j, kk: (i, 0, j))]
    elif use_bn_act:
        kernel = _conv_bn_leaky_kernel
        inputs = (w2, shift, patches)
        in_specs = [w_spec, s_spec, p_spec]
    else:
        kernel = _conv_bias_kernel
        inputs = (w2, shift, patches)
        in_specs = [w_spec, s_spec, p_spec]

    bytes_acc = (patches.size * 2                          # bf16 patch stream
                 + n * n_hw * cout * k_pad * 2             # weights, re-streamed per tile
                 + n * cout * ohw_pad * out_isz)
    if skip is not None:
        bytes_acc += n * cout * ohw_pad * skip_isz
    cost = pl.CostEstimate(flops=2 * n * cout * k_pad * ohw_pad,
                           transcendentals=0,
                           bytes_accessed=int(bytes_acc))

    out = pl.pallas_call(
        kernel,
        out_shape=jax.ShapeDtypeStruct((n, cout, ohw_pad), out_dtype),
        grid_spec=pltpu.PrefetchScalarGridSpec(
            num_scalar_prefetch=0,
            grid=(n, n_hw, n_k),
            in_specs=in_specs,
            out_specs=o_spec,
            scratch_shapes=[pltpu.VMEM((cout, t_hw), jnp.float32)],
        ),
        compiler_params=pltpu.CompilerParams(
            dimension_semantics=("parallel", "parallel", "arbitrary"),
            vmem_limit_bytes=VMEM_CAP,
        ),
        cost_estimate=cost,
    )(*inputs)

    return out[:, :, :ohw].reshape(n, cout, oh, ow)


# ---------------------------------------------------------------------------
# YOLOv3 composite blocks built from the fused kernel
# ---------------------------------------------------------------------------
def residual_block(x, blocks, *, use_residual=True):
    """ResidualBlock.forward: blocks = [(params_1x1, params_3x3), ...]."""
    for p1, p3 in blocks:
        y = cnn_block(x, p1, stride=1, padding=0)
        x = cnn_block(y, p3, stride=1, padding=1,
                      skip=x if use_residual else None)   # fused skip add
    return x


def scale_prediction(x, p_a, p_b, num_classes):
    """ScalePrediction.forward."""
    n, _, h, w = x.shape
    y = cnn_block(x, p_a, stride=1, padding=1)
    y = cnn_block(y, p_b, stride=1, padding=0)     # bn_act=False: conv + bias
    y = y.reshape(n, 3, num_classes + 5, h, w)
    return jnp.transpose(y, (0, 1, 3, 4, 2))


# ---------------------------------------------------------------------------
# pure-JAX reference (mirrors the module semantics with the same bf16 operands)
# ---------------------------------------------------------------------------
def cnn_block_ref(x, params, *, stride=1, padding=0, skip=None):
    w = params["w"].astype(jnp.float32)
    if params["use_bn_act"]:
        scale = params["gamma"] * jax.lax.rsqrt(params["var"] + BN_EPS)
        w = w * scale[:, None, None, None]
        shift = params["beta"] - params["mean"] * scale
    else:
        shift = params["b"]
    y = jax.lax.conv_general_dilated(
        x.astype(jnp.bfloat16), w.astype(jnp.bfloat16),
        (stride, stride), [(padding, padding)] * 2,
        dimension_numbers=("NCHW", "OIHW", "NCHW"),
        preferred_element_type=jnp.float32)
    y = y + shift[None, :, None, None]
    if params["use_bn_act"]:
        y = jnp.where(y > 0, y, LEAKY_SLOPE * y)
    if skip is not None:
        y = skip.astype(jnp.float32) + y
    return y.astype(x.dtype)


def residual_block_ref(x, blocks, *, use_residual=True):
    for p1, p3 in blocks:
        y = cnn_block_ref(x, p1, stride=1, padding=0)
        x = cnn_block_ref(y, p3, stride=1, padding=1,
                          skip=x if use_residual else None)
    return x


def scale_prediction_ref(x, p_a, p_b, num_classes):
    n, _, h, w = x.shape
    y = cnn_block_ref(x, p_a, stride=1, padding=1)
    y = cnn_block_ref(y, p_b, stride=1, padding=0)
    y = y.reshape(n, 3, num_classes + 5, h, w)
    return jnp.transpose(y, (0, 1, 3, 4, 2))


# ---------------------------------------------------------------------------
# parameter init
# ---------------------------------------------------------------------------
def init_cnn_block(key, cin, cout, k, *, use_bn_act=True):
    keys = jax.random.split(key, 6)
    p = {"w": 0.1 * jax.random.normal(keys[0], (cout, cin, k, k), jnp.float32),
         "use_bn_act": use_bn_act}
    if use_bn_act:
        p["gamma"] = 1.0 + 0.1 * jax.random.normal(keys[1], (cout,), jnp.float32)
        p["beta"] = 0.1 * jax.random.normal(keys[2], (cout,), jnp.float32)
        p["mean"] = 0.1 * jax.random.normal(keys[3], (cout,), jnp.float32)
        p["var"] = jax.random.uniform(keys[4], (cout,), jnp.float32, 0.5, 1.5)
    else:
        p["b"] = 0.1 * jax.random.normal(keys[5], (cout,), jnp.float32)
    return p


if __name__ == "__main__":
    root = jax.random.PRNGKey(0)
    keys = jax.random.split(root, 12)
    num_classes = 3

    # Small YOLOv3-style stack: conv, strided downsample, residual block,
    # then the 'S' head (no-residual block -> 1x1 CNNBlock -> ScalePrediction).
    x = jax.random.normal(keys[0], (2, 3, 16, 16), jnp.float32)

    p_conv1 = init_cnn_block(keys[1], 3, 16, 3)               # like config (32,3,1)
    p_conv2 = init_cnn_block(keys[2], 16, 32, 3)              # like config (64,3,2)
    res1 = [(init_cnn_block(keys[3], 32, 16, 1),
             init_cnn_block(keys[4], 16, 32, 3))]             # ResidualBlock(32)
    res_s = [(init_cnn_block(keys[5], 32, 16, 1),
              init_cnn_block(keys[6], 16, 32, 3))]            # 'S' no-residual block
    p_route = init_cnn_block(keys[7], 32, 16, 1)              # 'S' 1x1 CNNBlock
    p_sp_a = init_cnn_block(keys[8], 16, 32, 3)               # ScalePrediction conv1
    p_sp_b = init_cnn_block(keys[9], 32, (num_classes + 5) * 3, 1,
                            use_bn_act=False)                 # ScalePrediction conv2

    def forward(fcnn, fres, fsp, xin):
        h = fcnn(xin, p_conv1, stride=1, padding=1)
        h = fcnn(h, p_conv2, stride=2, padding=1)
        h = fres(h, res1, use_residual=True)
        h = fres(h, res_s, use_residual=False)
        h = fcnn(h, p_route, stride=1, padding=0)
        return h, fsp(h, p_sp_a, p_sp_b, num_classes)

    feat, pred = forward(cnn_block, residual_block, scale_prediction, x)
    feat = jax.block_until_ready(feat)
    pred = jax.block_until_ready(pred)

    feat_ref, pred_ref = forward(cnn_block_ref, residual_block_ref,
                                 scale_prediction_ref, x)

    assert feat.shape == (2, 16, 8, 8), feat.shape
    assert pred.shape == (2, 3, 8, 8, num_classes + 5), pred.shape
    assert jnp.max(jnp.abs(feat - feat_ref)) < 5e-3
    assert jnp.max(jnp.abs(pred - pred_ref)) < 5e-3

    # Extra check: exercise the K-tiled reduction path (k_dim=288 > tk=128 -> 3 tiles).
    xk = jax.random.normal(keys[10], (1, 32, 12, 12), jnp.float32)
    pk = init_cnn_block(keys[11], 32, 16, 3)
    yk = jax.block_until_ready(cnn_block(xk, pk, stride=1, padding=1, tk=128))
    yk_ref = cnn_block_ref(xk, pk, stride=1, padding=1)
    assert yk.shape == yk_ref.shape, (yk.shape, yk_ref.shape)
    assert jnp.max(jnp.abs(yk - yk_ref)) < 5e-3

    print("KERNEL_OK")
</pallas_src>

<mosaic_0001>
module attributes {stable_mosaic.version = 11 : i64} {
  func.func @_conv_bn_leaky_kernel(%arg0: i32, %arg1: i32, %arg2: i32, %arg3: memref<16x27xbf16, #tpu.memory_space<vmem>>, %arg4: memref<16x1xf32, #tpu.memory_space<vmem>>, %arg5: memref<1x27x256xbf16, #tpu.memory_space<vmem>>, %arg6: memref<1x16x256xf32, #tpu.memory_space<vmem>>, %arg7: memref<16x256xf32, #tpu.memory_space<vmem>>) attributes {dimension_semantics = [#tpu.dimension_semantics<parallel>, #tpu.dimension_semantics<parallel>, #tpu.dimension_semantics<arbitrary>], iteration_bounds = array<i64: 2, 1, 1>, scalar_prefetch = 0 : i64, scratch_operands = 1 : i64, tpu.core_type = #tpu.core_type<tc>, window_params = [{transform_indices = @transform_0, window_bounds = array<i64: 16, 27>}, {pipeline_mode = #tpu.pipeline_mode<synchronous>, transform_indices = @transform_1, window_bounds = array<i64: 16, 1>}, {transform_indices = @transform_2, window_bounds = array<i64: 1, 27, 256>}, {transform_indices = @transform_3, window_bounds = array<i64: 1, 16, 256>}]} {
    %c0_i32 = arith.constant 0 : i32
    %0 = arith.cmpi eq, %arg2, %c0_i32 : i32
    %1 = arith.extui %0 : i1 to i32
    %c0_i32_0 = arith.constant 0 : i32
    %2 = arith.cmpi ne, %1, %c0_i32_0 : i32
    scf.if %2 {
      %cst_11 = arith.constant 0.000000e+00 : f32
      %13 = vector.broadcast %cst_11 : f32 to vector<16x256xf32>
      %c0_12 = arith.constant 0 : index
      %c0_13 = arith.constant 0 : index
      %14 = vector.load %arg7[%c0_12, %c0_13] : memref<16x256xf32, #tpu.memory_space<vmem>>, vector<16x256xf32>
      tpu.vector_store %arg7[%c0_12, %c0_13], %13 {strides = array<i32>} : memref<16x256xf32, #tpu.memory_space<vmem>>, vector<16x256xf32>,
    } else {
    }
    %c0 = arith.constant 0 : index
    %c0_1 = arith.constant 0 : index
    %3 = vector.load %arg7[%c0, %c0_1] : memref<16x256xf32, #tpu.memory_space<vmem>>, vector<16x256xf32>
    %c0_2 = arith.constant 0 : index
    %c0_3 = arith.constant 0 : index
    %4 = vector.load %arg3[%c0_2, %c0_3] : memref<16x27xbf16, #tpu.memory_space<vmem>>, vector<16x27xbf16>
    %c0_4 = arith.constant 0 : index
    %c0_5 = arith.constant 0 : index
    %c0_6 = arith.constant 0 : index
    %5 = vector.load %arg5[%c0_4, %c0_5, %c0_6] : memref<1x27x256xbf16, #tpu.memory_space<vmem>>, vector<1x27x256xbf16>
    %6 = vector.shape_cast %5 : vector<1x27x256xbf16> to vector<27x256xbf16>
    %cst = arith.constant dense<0.000000e+00> : vector<16x256xf32>
    %7 = tpu.matmul %4, %6, %cst {dimension_numbers = #tpu.dot_dimension_numbers<[1], [0], [0], [1], [0, 0, 1, 1], [], []>} : vector<16x27xbf16>, vector<27x256xbf16>, vector<16x256xf32> -> vector<16x256xf32>
    %8 = arith.addf %3, %7 : vector<16x256xf32>
    %c0_7 = arith.constant 0 : index
    %c0_8 = arith.constant 0 : index
    %9 = vector.load %arg7[%c0_7, %c0_8] : memref<16x256xf32, #tpu.memory_space<vmem>>, vector<16x256xf32>
    tpu.vector_store %arg7[%c0_7, %c0_8], %8 {strides = array<i32>} : memref<16x256xf32, #tpu.memory_space<vmem>>, vector<16x256xf32>,
    %c0_i32_9 = arith.constant 0 : i32
    %10 = arith.cmpi eq, %arg2, %c0_i32_9 : i32
    %11 = arith.extui %10 : i1 to i32
    %c0_i32_10 = arith.constant 0 : i32
    %12 = arith.cmpi ne, %11, %c0_i32_10 : i32
    scf.if %12 {
      %c0_11 = arith.constant 0 : index
      %c0_12 = arith.constant 0 : index
      %13 = vector.load %arg7[%c0_11, %c0_12] : memref<16x256xf32, #tpu.memory_space<vmem>>, vector<16x256xf32>
      %c0_13 = arith.constant 0 : index
      %c0_14 = arith.constant 0 : index
      %14 = vector.load %arg4[%c0_13, %c0_14] : memref<16x1xf32, #tpu.memory_space<vmem>>, vector<16x1xf32>
      %15 = vector.broadcast %14 : vector<16x1xf32> to vector<16x256xf32>
      %16 = arith.addf %13, %15 : vector<16x256xf32>
      %cst_15 = arith.constant 0.000000e+00 : f32
      %17 = vector.broadcast %cst_15 : f32 to vector<16x256xf32>
      %18 = arith.cmpf ogt, %16, %17 : vector<16x256xf32>
      %cst_16 = arith.constant 1.000000e-01 : f32
      %19 = vector.broadcast %cst_16 : f32 to vector<16x256xf32>
      %20 = arith.mulf %19, %16 : vector<16x256xf32>
      %21 = arith.select %18, %16, %20 : vector<16x256xi1>, vector<16x256xf32>
      %c0_17 = arith.constant 0 : index
      %c0_18 = arith.constant 0 : index
      %c0_19 = arith.constant 0 : index
      %22 = vector.load %arg6[%c0_17, %c0_18, %c0_19] : memref<1x16x256xf32, #tpu.memory_space<vmem>>, vector<1x16x256xf32>
      %23 = vector.shape_cast %22 : vector<1x16x256xf32> to vector<16x256xf32>
      %24 = vector.shape_cast %21 : vector<16x256xf32> to vector<1x16x256xf32>
      tpu.vector_store %arg6[%c0_17, %c0_18, %c0_19], %24 {strides = array<i32>} : memref<1x16x256xf32, #tpu.memory_space<vmem>>, vector<1x16x256xf32>,
    } else {
    }
    return
  }
  func.func @transform_0(%arg0: i32, %arg1: i32, %arg2: i32) -> (i32, i32) {
    %c0_i32 = arith.constant 0 : i32
    %c0_i32_0 = arith.constant 0 : i32
    return %c0_i32, %arg2 : i32, i32
  }
  func.func @transform_1(%arg0: i32, %arg1: i32, %arg2: i32) -> (i32, i32) {
    %c0_i32 = arith.constant 0 : i32
    %c0_i32_0 = arith.constant 0 : i32
    %c0_i32_1 = arith.constant 0 : i32
    return %c0_i32, %c0_i32_0 : i32, i32
  }
  func.func @transform_2(%arg0: i32, %arg1: i32, %arg2: i32) -> (i32, i32, i32) {
    %c0_i32 = arith.constant 0 : i32
    return %arg0, %arg2, %arg1 : i32, i32, i32
  }
  func.func @transform_3(%arg0: i32, %arg1: i32, %arg2: i32) -> (i32, i32, i32) {
    %c0_i32 = arith.constant 0 : i32
    %c0_i32_0 = arith.constant 0 : i32
    return %arg0, %c0_i32, %arg1 : i32, i32, i32
  }
}

</mosaic_0001>

<bundles_post_ra>
// kernel: tpu_custom_call.1
= control target key start
LH: loop header
LB: loop body
LE: loop exit
PB: predicated region body
PF: predicated region fallthrough
CT: control target
= control target key end

     0   :  { %8 = vsyncpa [#allocation4], 0  ;;  %s827_s0 = inlined_call_operand.vmem [shape: bf16[16,27], index: 0, kind: input, shape index: {}]   ;;  %s828_s1 = inlined_call_operand.vmem [shape: f32[16,1], index: 1, kind: input, shape index: {}]   ;;  %s829_s2 = inlined_call_operand.vmem [shape: bf16[2,27,256], index: 2, kind: input, shape index: {}]   ;;  %s830_s3 = inlined_call_operand.hbm [shape: f32[2,16,256], index: 3, kind: output, shape index: {}]  }
   0x1   :  { %10 = vsyncpa [#allocation4 + $0x1], 0  ;;  %s700_s12 = smov 0   ;;  %s702_s13 = smov 0  }
   0x2   :  { %s704_s14 = smov 0   ;;  %s706_s15 = smov 0  }
   0x3   :  { %s708_s16 = smov 0   ;;  %s710_s17 = smov 0  }
   0x4 LB: > { %s508_s18 = sadd.s32 4294967295, %s673_s17   ;;  %s509_s19 = sadd.s32 4294967294, %s673_s17   ;;  %s673_s17 = sphi %s710_s17, %s16_s17   ;;  %s669_s16 = sphi %s708_s16, %s837_s16   ;;  %s665_s15 = sphi %s706_s15, %s836_s15   ;;  %s661_s14 = sphi %s704_s14, %s835_s14   ;;  %s657_s13 = sphi %s702_s13, %s834_s13   ;;  %s653_s12 = sphi %s700_s12, %s833_s12  }
   0x5   : > { %s35_s20 = sadd.s32 1, %s669_s16  ;;  %s121_s21 = sadd.s32 1, %s661_s14 }
   0x6   : > { %p37_p0 = scmp.ge.s32.totalorder %s35_s20, 2  ;;  %p131_p1 = scmp.ne.s32.totalorder %s661_s14, %s657_s13 }
   0x7   : > { %p132_p2 = scmp.eq.s32.totalorder %s508_s18, 1  ;;  %p137_p3 = scmp.ne.s32.totalorder %s657_s13, %s653_s12 }
   0x8   : > { %s839_s20 = smov (%p37_p0, %s35_s20), 0  ;;  %p138_p5 = scmp.eq.s32.totalorder %s509_s19, 1 }
   0x9   : > { %p740_p4 = por %p132_p2, %p131_p1  ;;  %s116_s23 = ssub.s32 %s669_s16, %s839_s20 }
   0xa   : > { %p513_p6 = scmp.ge.s32.totalorder %s673_s17, 1  ;;  %p119_p7 = scmp.eq.s32.totalorder %s116_s23, 0 }
   0xb   : > { %p747_p8 = por %p138_p5, %p137_p3  ;;  %p185_p9 = scmp.lt.s32.totalorder %s673_s17, 3 }
   0xc   : > { %s753_s25 = scalar_select %p119_p7, %s661_s14, %s121_s21  }
   0xd   : > { %p186_p10 = pnand %p513_p6, %p185_p9 }
   0xe   : > { %p228_p11 = scmp.lt.s32.totalorder (!%p186_p10), %s665_s15, 1  ;;  %s219_s10 = sand.u32 (!%p186_p10), 1, %s657_s13  }
   0xf   : > { %189 = sbr.rel (%p186_p10) target bundleno = 253 (0xfd), region = 32  ;;  %s514_s11 = sshll.u32 (!%p186_p10), %s219_s10, 5 }
  0x10   : > { %s221_s18 = scalar_lea.vmem (!%p186_p10), [#allocation3], %s514_s11  ;;  %s529_s21 = sshll.u32 (!%p186_p10), %s665_s15, 9 }
  0x11   : > { %s405_s19 = sshll.u32 (!%p186_p10), %s221_s18, 4  ;;  %s778_s27 = scalar_lea.hbm (!%p186_p10), %s830_s3, %s529_s21  ;;  %s773_s19 = int_to_ptr.vmem [resolvable:$true] %s405_s19 }
  0x12   : > { %s597_s28 = scalar_lea.vmem (!%p186_p10), %s773_s19, 512 }
  0x13   : > { %p598_p12 = scmp.ne.s32.totalorder (!%p186_p10), %s773_s19, %s597_s28 }
  0x14   : > { %vm289_vm0 = vcmask 1044480   ;;  %v675_v0 = vmov 0   ;;  %s229_s26 = scalar_select %p228_p11, %s665_s15, 1  ;;  %vm290_vm1 = vcmask 1045504   ;;  %v676_v1 = vmov 65535   ;;  %v357_v3 = vld [vmem:[%s828_s1] sm:$0xff] }
  0x15   : > { %331 = vmatprep.mubr.bf16.mxu0 %v675_v0  ;;  %589 = vset.pattern.permute.xlu0 %v675_v0  ;;  %v291_v2 = vsel %vm289_vm0, 4294967295, %v676_v1  ;;  %v358_v4 = vld [vmem:[%s828_s1 + $0x8] sm:$0xff]  ;;  %v596_v12 = vld [vmem:[%s827_s0] sm:$0xff]   ;;  %vm285_vm2 = vcmask 220160   ;;  %s782_s15 = scalar_lea.sflag [#allocation4], %s219_s10  ;;  %p599_p13 = pnand %p598_p12, %p740_p4 }
  0x16   : > { %361 = vperm.xlu0 %589, %v357_v3   ;;  %s528_s29 = sshll.u32 %s229_s26, 5  ;;  %v292_v5 = vsel %vm290_vm1, %v291_v2, 0 }
  0x17   : > { %s239_s7 = scalar_lea.vmem %s829_s2, %s528_s29  ;;  %p600_p0 = pneg %p599_p13 }
  0x18   : > { %v590_v6 = vld [vmem:[%s239_s7 + $0x14] ss:$8 sps:$4 sm:$0x3f]   ;;  %v592_v7 = vld [vmem:[%s239_s7 + $0x10] ss:$8 sps:$4 sm:$0x3f]  }
  0x19   : > { %v297_v8 = vand.u32 %v590_v6, %v292_v5  ;;  %v593_v9 = vld [vmem:[%s239_s7 + $0x4] ss:$8 sps:$4 sm:$0xff]   ;;  %v294_v10 = vand.u32 %v592_v7, %v292_v5  ;;  %v595_v11 = vld [vmem:[%s239_s7] ss:$8 sps:$4 sm:$0xff]   ;;  %s677_s29 = smov [#allocation3]  }
  0x1a   : > { %366 = vperm.xlu0 %589, %v358_v4   ;;  %s601_s30 = sshll.u32 %s677_s29, 4  ;;  %s602_s30 = int_to_ptr.vmem [resolvable:$false] %s601_s30 }
  0x1b   : > { %311 = vmatprep.subr.bf16.mxu0 %v297_v8  ;;  %s603_s4 = scalar_lea.vmem %s602_s30, 1024  ;;  %p604_p1 = scmp.lt.s32.totalorder %s773_s19, %s602_s30 }
  0x1c   : > { %312 = vmatpush1.bf16.msra.mxu0 %v294_v10  ;;  %p605_p2 = scmp.lt.s32.totalorder %s603_s4, %s597_s28 }
  0x1d   : > { %313 = vmatprep.subr.bf16.mxu0 %v593_v9 }
  0x1e   : > { %p606_p3 = por %p605_p2, %p604_p1 }
  0x20   : > { %314 = vmatpush1.bf16.msra.mxu0 %v595_v11  ;;  %p607_p5 = pnand %p606_p3, %p600_p0 }
  0x23   : > { %522 = vmatmul.mubr.msk.bf16.vlgmr.msra.gmra.mxu0 %vm285_vm2, %v596_v12 }
  0x91   : > { %v362_v13 = vpop.permute.xlu0 %361 }
  0x95   : > { %v367_v19 = vpop.permute.xlu0 %366 }
  0xe3   : > { %v333_v14 = vpop.f32.mrf.mxu0 }
  0xe4   : > { %v369_v15 = vadd.f32 %v362_v13, %v333_v14 }
  0xe5   : > { %v335_v16 = vpop.f32.mrf.mxu0 }
  0xe6   : > { %vm373_vm3 = vcmp.gt.f32.partialorder %v369_v15, 0.0  ;;  %v377_v17 = vmul.f32 0.1, %v369_v15  ;;  %v370_v18 = vadd.f32 %v362_v13, %v335_v16 }
  0xe7   : > { %v337_v20 = vpop.f32.mrf.mxu0 }
  0xe8   : > { %v381_v21 = vsel %vm373_vm3, %v369_v15, %v377_v17  ;;  %vm374_vm4 = vcmp.gt.f32.partialorder %v370_v18, 0.0  ;;  %v378_v22 = vmul.f32 0.1, %v370_v18  ;;  %v371_v23 = vadd.f32 %v367_v19, %v337_v20 }
  0xe9   : > { %385 = vst [vmem:[%s221_s18] sm:$0xff] %v381_v21  ;;  %v339_v24 = vpop.f32.mrf.mxu0 }
  0xea   : > { %v382_v25 = vsel %vm374_vm4, %v370_v18, %v378_v22  ;;  %vm375_vm5 = vcmp.gt.f32.partialorder %v371_v23, 0.0  ;;  %v379_v26 = vmul.f32 0.1, %v371_v23  ;;  %v372_v27 = vadd.f32 %v367_v19, %v339_v24 }
  0xeb   : > { %386 = vst [vmem:[%s221_s18 + $0x8] sm:$0xff] %v382_v25 }
  0xec   : > { %v383_v28 = vsel %vm375_vm5, %v371_v23, %v379_v26  ;;  %vm376_vm6 = vcmp.gt.f32.partialorder %v372_v27, 0.0  ;;  %v380_v29 = vmul.f32 0.1, %v372_v27 }
  0xed   : > { %387 = vst [vmem:[%s221_s18 + $0x10] sm:$0xff] %v383_v28 }
  0xee   : > { %v384_v30 = vsel %vm376_vm6, %v372_v27, %v380_v29 }
  0xef   : > { %388 = vst [vmem:[%s221_s18 + $0x18] sm:$0xff] %v384_v30 }
  0xf0   : > { %610 = shalt.err (!%p607_p5)
}
  0xf1   : > { %s611_s5 = scalar_lea.hbm %s778_s27, 512  ;;  %s615_s8 = scalar_lea.hbm %s830_s3, 1024 }
  0xf2   : > { %p612_p6 = scmp.ne.s32.totalorder %s778_s27, %s611_s5  ;;  %p616_p10 = scmp.lt.s32.totalorder %s778_s27, %s830_s3 }
  0xf3   : > { %p617_p11 = scmp.lt.s32.totalorder %s615_s8, %s611_s5 }
  0xf4   : > { %p613_p7 = pnand %p612_p6, %p740_p4 }
  0xf5   : > { %p618_p12 = por %p617_p11, %p616_p10 }
  0xf6   : > { %p614_p9 = pneg %p613_p7 }
  0xf8   : > { %p619_p13 = pnand %p618_p12, %p614_p9 }
  0xfa   : > { %622 = shalt.err (!%p619_p13)
}
  0xfb   : > { %s678_s11 = smov 256   ;;  %s679_s18 = smov 16  }
  0xfc   : > { %530 = dma.vmem_to_hbm [thread:$0]  (%p740_p4), %s773_s19, 512, %s778_s27, %s782_s15, %s678_s11, %s678_s11, %s679_s18  }
  0xfd PF: > { %p536_p0 = scmp.ge.s32.totalorder %s673_s17, 2  ;;  %s420_s21 = sand.u32 1, %s653_s12  }
  0xfe   : > { %s421_s23 = scalar_lea.sflag [#allocation4], %s420_s21 }
  0xff   : > { %p533_p1 = pnand %p536_p0, %p747_p8 }
 0x101   : > { %p534_p2 = pneg %p533_p1 }
 0x103   : > { %648 = dma.done.wait (%p534_p2), %s421_s23, 512  }
 0x104   : > { %650 = vsyncadd (%p534_p2), %s421_s23, 4294966784  ;;  %s16_s17 = sadd.s32 1, %s673_s17   ;;  %s833_s12 = smov %s657_s13 }
 0x105   : > { %p13_p3 = scmp.ge.s32.totalorder %s16_s17, 4   ;;  %s834_s13 = smov %s661_s14 }
 0x106   : > { %s835_s14 = smov %s753_s25  ;;  %s836_s15 = smov %s669_s16 }
 0x107   : > { %s837_s16 = smov %s839_s20  ;;  %15 = sbr.rel (!%p13_p3) target bundleno = 4 (0x4), region = 78 }
 0x10c   :  { %426 = vsyncpa [#allocation4], 1 }
 0x10d   :  { %428 = vsyncpa [#allocation4 + $0x1], 1 }

</bundles_post_ra>
